<compile_context>
chip_gen: v7x
topology: tpu7x:2x2x1
jax: 0.10.0
libtpu: 0.0.40
codegen_flags: <defaults>
</compile_context>

<pallas_src>
import functools

import jax
import jax.numpy as jnp
from jax.experimental import pallas as pl
from jax.experimental.pallas import tpu as pltpu


def _fast_recip(x):
    """EUP approximate reciprocal refined by one Newton step (~f32 accurate)."""
    r = pl.reciprocal(x, approx=True)
    return r * (2.0 - x * r)


def _sop_trans_loss_kernel(out_ref, label_ref, u_ref, v_ref, t_ref,
                           pred_ref, ce_ref, mse_ref, *, Tr, eps):
    # Lane-dense layout: classes on sublanes (axis 0), batch on lanes (axis 1).
    logits = out_ref[...].astype(jnp.float32)    # (C, TB)
    label = label_ref[...].astype(jnp.float32)   # (C, TB)
    u_row = u_ref[...].astype(jnp.float32)       # (1, TB)  (u is per-example)
    v_sel = v_ref[...].astype(jnp.float32)       # (C, TB)
    t_row = t_ref[...].astype(jnp.float32)       # (C, TB)
    C = logits.shape[0]

    # T = clamp(trans[d1_label]**2, 0, 1); T_balance[d1_label] == ones
    T = jnp.clip(t_row * t_row, 0.0, 1.0)
    U_sq = jnp.clip((u_row * u_row) * label, 0.0, 1.0)
    V_sq = jnp.clip((v_sel * v_sel) * (1.0 - label), 0.0, 1.0)
    E = U_sq - V_sq

    # Numerically stable softmax over classes (sublane reduction).
    m = jnp.max(logits, axis=0, keepdims=True)                       # (1, TB)
    e = jnp.exp(logits - m)
    softmax = e * _fast_recip(jnp.sum(e, axis=0, keepdims=True))

    # mixer = T*Tr + (1-Tr)*T_balance with T_balance == 1.  Specialize Tr == 0
    # (mixer identically 1) and otherwise fold the ones tensor away.
    if Tr == 0.0:
        scaled = softmax
    else:
        scaled = softmax * ((1.0 - Tr) + Tr * T)

    pred = jnp.maximum(scaled + E, eps)
    # F.normalize(p=1, dim=1, eps=eps): x / max(||x||_1, eps).
    # pred >= eps > 0, so no abs is needed for the L1 norm.
    l1 = jnp.sum(pred, axis=0, keepdims=True)
    pred = pred * _fast_recip(jnp.maximum(l1, eps))
    pred = jnp.clip(pred, eps, 1.0)

    # one_hot(argmax over classes), first-occurrence tie-break (== torch.argmax).
    iota = jax.lax.broadcasted_iota(jnp.int32, logits.shape, 0)
    is_max = logits == m
    first = jnp.min(jnp.where(is_max, iota, C), axis=0, keepdims=True)
    one_hot = (iota == first).astype(jnp.float32)

    # Per-example partial sums (lane-dense outputs), reduced outside the kernel.
    diff = one_hot * T + E - label
    mse_ref[...] = jnp.sum(diff * diff, axis=0, keepdims=True)            # (1, TB)
    ce_ref[...] = -jnp.sum(label * jnp.log(pred), axis=0, keepdims=True)  # (1, TB)
    pred_ref[...] = pred.astype(pred_ref.dtype)


def _pick_batch_tile(b, c):
    """Batch tile (lanes) sized conservatively for the smallest scoped VMEM
    (v5e default 16 MiB): 2 double-buffered copies of ~(5C+3) f32 rows."""
    lane = 128
    budget = 16 * 1024 * 1024
    tb_max = budget // (8 * (5 * c + 3))
    tb = max(lane, min(2048, (tb_max // lane) * lane))
    b_pad_min = ((b + lane - 1) // lane) * lane
    if b_pad_min <= tb:
        tb = b_pad_min
    b_pad = ((b + tb - 1) // tb) * tb
    return tb, b_pad


def sop_trans_loss_forward(index, output, output2, label, d1_label,
                           u, v, trans, *, Tr=0.0, ratio_balance=0.0):
    """JAX/Pallas equivalent of sop_trans_loss.forward.
    output2 is unused (it is unused in the PyTorch forward as well)."""
    del output2
    eps = 1e-4
    B, C = output.shape

    # Index glue (gathers) in plain JAX; heavy math in the kernel.
    u_sel = u[index]          # (B, 1)
    v_sel = v[index]          # (B, C)
    t_row = trans[d1_label]   # (B, C)

    tb, b_pad = _pick_batch_tile(B, C)
    grid = (b_pad // tb,)

    # Transpose to (C, B) and zero-pad batch up to a lane multiple.  Inputs
    # stay in their native dtype (the kernel upcasts); pred comes back as f32.
    def to_lane_dense(x):                       # (B, C) -> (C, b_pad)
        return jnp.pad(x.T, ((0, 0), (0, b_pad - B)))

    out_t = to_lane_dense(output)
    lab_t = to_lane_dense(label)
    v_t = to_lane_dense(v_sel)
    t_t = to_lane_dense(t_row)
    u_t = jnp.pad(u_sel.T, ((0, 0), (0, b_pad - B)))   # (1, b_pad)

    kernel = functools.partial(_sop_trans_loss_kernel, Tr=float(Tr), eps=eps)

    wide = lambda i: (0, i)   # (C, tb) blocks walking the batch lanes
    row = lambda i: (0, i)    # (1, tb) blocks

    in_bytes = sum(int(x.size) * x.dtype.itemsize
                   for x in (out_t, lab_t, u_t, v_t, t_t))
    out_bytes = (C * b_pad + 2 * b_pad) * 4
    cost = pl.CostEstimate(flops=30 * C * b_pad,
                           transcendentals=2 * C * b_pad + 2 * b_pad,
                           bytes_accessed=in_bytes + out_bytes)

    pred_t, ce_part, mse_part = pl.pallas_call(
        kernel,
        out_shape=(jax.ShapeDtypeStruct((C, b_pad), jnp.float32),
                   jax.ShapeDtypeStruct((1, b_pad), jnp.float32),
                   jax.ShapeDtypeStruct((1, b_pad), jnp.float32)),
        grid_spec=pltpu.PrefetchScalarGridSpec(
            num_scalar_prefetch=0,
            grid=grid,
            in_specs=[pl.BlockSpec((C, tb), wide),
                      pl.BlockSpec((C, tb), wide),
                      pl.BlockSpec((1, tb), row),
                      pl.BlockSpec((C, tb), wide),
                      pl.BlockSpec((C, tb), wide)],
            out_specs=(pl.BlockSpec((C, tb), wide),
                       pl.BlockSpec((1, tb), row),
                       pl.BlockSpec((1, tb), row))),
        compiler_params=pltpu.CompilerParams(
            dimension_semantics=("parallel",),
            vmem_limit_bytes=32 * 1024 * 1024),
        cost_estimate=cost,
    )(out_t, lab_t, u_t, v_t, t_t)

    # Final tiny reductions of the per-example partials in plain JAX.
    ce = jnp.mean(ce_part[0, :B])
    mse = jnp.sum(mse_part[0, :B]) / jnp.float32(B)
    loss = ce + mse

    pred_valid = pred_t[:, :B]                  # (C, B)
    if ratio_balance > 0.0:
        avg_pred = jnp.clip(jnp.mean(pred_valid, axis=1), eps, 1.0)   # (C,)
        balance_kl = -jnp.sum((1.0 / C) * jnp.log(avg_pred))
        loss = loss + ratio_balance * balance_kl

    return loss, pred_valid.T                   # pred back to (B, C)


def _reference_forward(index, output, output2, label, d1_label,
                       u, v, trans, *, Tr=0.0, ratio_balance=0.0):
    """Pure-JAX reference mirroring the PyTorch module exactly."""
    del output2
    eps = 1e-4
    B, C = output.shape
    T = jnp.clip(trans[d1_label] ** 2, 0.0, 1.0)
    T_balance = jnp.ones((B, C), jnp.float32)
    U_square = jnp.clip(u[index] ** 2 * label, 0.0, 1.0)
    V_square = jnp.clip(v[index] ** 2 * (1.0 - label), 0.0, 1.0)
    softmax = jax.nn.softmax(output, axis=1)
    pred = jnp.maximum(softmax * (T * Tr + (1.0 - Tr) * T_balance)
                       + U_square - V_square, eps)
    pred = pred / jnp.maximum(jnp.sum(jnp.abs(pred), axis=1, keepdims=True), eps)
    pred = jnp.clip(pred, eps, 1.0)
    one_hot = jax.nn.one_hot(jnp.argmax(output, axis=1), C, dtype=jnp.float32)
    mse = jnp.sum((one_hot * T + U_square - V_square - label) ** 2) / B
    loss = jnp.mean(-jnp.sum(label * jnp.log(pred), axis=-1)) + mse
    if ratio_balance > 0.0:
        avg_pred = jnp.clip(jnp.mean(pred, axis=0), eps, 1.0)
        loss = loss + ratio_balance * (-jnp.sum((1.0 / C) * jnp.log(avg_pred)))
    return loss, pred


if __name__ == "__main__":
    num_examp = 32
    num_classes = 10
    batch = 8
    # TODO(synk): ratio_consistency (=0.2) is stored in the PyTorch module but
    # never used in forward(), so it is not implemented here.

    key = jax.random.PRNGKey(0)
    k_u, k_v, k_out, k_out2, k_lab, k_d1, k_idx, k_t = jax.random.split(key, 8)

    # Parameters (matching __init__ / init_param):
    u = 1e-8 * jax.random.normal(k_u, (num_examp, 1), dtype=jnp.float32)
    v = 1e-8 * jax.random.normal(k_v, (num_examp, num_classes), dtype=jnp.float32)
    trans = jnp.ones((num_classes, num_classes), dtype=jnp.float32)  # normal(mean=1, std=0)
    # A second, perturbed trans to exercise the Tr>0 path with non-trivial T.
    trans2 = trans + 0.1 * jax.random.normal(k_t, trans.shape, dtype=jnp.float32)

    # Example inputs:
    index = jax.random.permutation(k_idx, num_examp)[:batch]
    output = jax.random.normal(k_out, (batch, num_classes), dtype=jnp.float32)
    output2 = jax.random.normal(k_out2, (batch, num_classes), dtype=jnp.float32)
    label = jax.nn.one_hot(
        jax.random.randint(k_lab, (batch,), 0, num_classes), num_classes,
        dtype=jnp.float32)
    d1_label = jax.random.randint(k_d1, (batch,), 0, num_classes)

    configs = ((0.0, 0.0, trans), (0.3, 0.1, trans2))
    for Tr, ratio_balance, tr_mat in configs:
        loss, pred = sop_trans_loss_forward(index, output, output2, label,
                                            d1_label, u, v, tr_mat, Tr=Tr,
                                            ratio_balance=ratio_balance)
        loss = jax.block_until_ready(loss)
        pred = jax.block_until_ready(pred)

        ref_loss, ref_pred = _reference_forward(index, output, output2, label,
                                                d1_label, u, v, tr_mat, Tr=Tr,
                                                ratio_balance=ratio_balance)
        assert jnp.allclose(loss, ref_loss, rtol=1e-3, atol=1e-3), (
            Tr, ratio_balance, loss, ref_loss)
        assert jnp.allclose(pred, ref_pred, rtol=1e-3, atol=1e-5), (
            Tr, ratio_balance)

    print("KERNEL_OK")
</pallas_src>

<mosaic_0001>
module attributes {stable_mosaic.version = 11 : i64} {
  func.func @_sop_trans_loss_kernel(%arg0: i32, %arg1: memref<10x128xf32, #tpu.memory_space<vmem>>, %arg2: memref<10x128xf32, #tpu.memory_space<vmem>>, %arg3: memref<1x128xf32, #tpu.memory_space<vmem>>, %arg4: memref<10x128xf32, #tpu.memory_space<vmem>>, %arg5: memref<10x128xf32, #tpu.memory_space<vmem>>, %arg6: memref<10x128xf32, #tpu.memory_space<vmem>>, %arg7: memref<1x128xf32, #tpu.memory_space<vmem>>, %arg8: memref<1x128xf32, #tpu.memory_space<vmem>>) attributes {dimension_semantics = [#tpu.dimension_semantics<parallel>], iteration_bounds = array<i64: 1>, scalar_prefetch = 0 : i64, scratch_operands = 0 : i64, tpu.core_type = #tpu.core_type<tc>, window_params = [{transform_indices = @transform_0, window_bounds = array<i64: 10, 128>}, {transform_indices = @transform_1, window_bounds = array<i64: 10, 128>}, {transform_indices = @transform_2, window_bounds = array<i64: 1, 128>}, {transform_indices = @transform_3, window_bounds = array<i64: 10, 128>}, {transform_indices = @transform_4, window_bounds = array<i64: 10, 128>}, {transform_indices = @transform_5, window_bounds = array<i64: 10, 128>}, {transform_indices = @transform_6, window_bounds = array<i64: 1, 128>}, {transform_indices = @transform_7, window_bounds = array<i64: 1, 128>}]} {
    %c0 = arith.constant 0 : index
    %c0_0 = arith.constant 0 : index
    %0 = vector.load %arg1[%c0, %c0_0] : memref<10x128xf32, #tpu.memory_space<vmem>>, vector<10x128xf32>
    %c0_1 = arith.constant 0 : index
    %c0_2 = arith.constant 0 : index
    %1 = vector.load %arg2[%c0_1, %c0_2] : memref<10x128xf32, #tpu.memory_space<vmem>>, vector<10x128xf32>
    %c0_3 = arith.constant 0 : index
    %c0_4 = arith.constant 0 : index
    %2 = vector.load %arg3[%c0_3, %c0_4] : memref<1x128xf32, #tpu.memory_space<vmem>>, vector<1x128xf32>
    %c0_5 = arith.constant 0 : index
    %c0_6 = arith.constant 0 : index
    %3 = vector.load %arg4[%c0_5, %c0_6] : memref<10x128xf32, #tpu.memory_space<vmem>>, vector<10x128xf32>
    %c0_7 = arith.constant 0 : index
    %c0_8 = arith.constant 0 : index
    %4 = vector.load %arg5[%c0_7, %c0_8] : memref<10x128xf32, #tpu.memory_space<vmem>>, vector<10x128xf32>
    %5 = arith.mulf %4, %4 : vector<10x128xf32>
    %cst = arith.constant 0.000000e+00 : f32
    %cst_9 = arith.constant 1.000000e+00 : f32
    %6 = vector.broadcast %cst : f32 to vector<10x128xf32>
    %7 = arith.maximumf %6, %5 : vector<10x128xf32>
    %8 = vector.broadcast %cst_9 : f32 to vector<10x128xf32>
    %9 = arith.minimumf %8, %7 : vector<10x128xf32>
    %10 = arith.mulf %2, %2 : vector<1x128xf32>
    %11 = vector.broadcast %10 : vector<1x128xf32> to vector<10x128xf32>
    %12 = arith.mulf %11, %1 : vector<10x128xf32>
    %cst_10 = arith.constant 0.000000e+00 : f32
    %cst_11 = arith.constant 1.000000e+00 : f32
    %13 = vector.broadcast %cst_10 : f32 to vector<10x128xf32>
    %14 = arith.maximumf %13, %12 : vector<10x128xf32>
    %15 = vector.broadcast %cst_11 : f32 to vector<10x128xf32>
    %16 = arith.minimumf %15, %14 : vector<10x128xf32>
    %17 = arith.mulf %3, %3 : vector<10x128xf32>
    %cst_12 = arith.constant 1.000000e+00 : f32
    %18 = vector.broadcast %cst_12 : f32 to vector<10x128xf32>
    %19 = arith.subf %18, %1 : vector<10x128xf32>
    %20 = arith.mulf %17, %19 : vector<10x128xf32>
    %cst_13 = arith.constant 0.000000e+00 : f32
    %cst_14 = arith.constant 1.000000e+00 : f32
    %21 = vector.broadcast %cst_13 : f32 to vector<10x128xf32>
    %22 = arith.maximumf %21, %20 : vector<10x128xf32>
    %23 = vector.broadcast %cst_14 : f32 to vector<10x128xf32>
    %24 = arith.minimumf %23, %22 : vector<10x128xf32>
    %25 = arith.subf %16, %24 : vector<10x128xf32>
    %cst_15 = arith.constant dense<0xFF800000> : vector<128xf32>
    %26 = vector.multi_reduction <maximumf>, %0, %cst_15 [0] : vector<10x128xf32> to vector<128xf32>
    %27 = vector.shape_cast %26 : vector<128xf32> to vector<1x128xf32>
    %28 = vector.broadcast %27 : vector<1x128xf32> to vector<10x128xf32>
    %29 = arith.subf %0, %28 : vector<10x128xf32>
    %30 = math.exp %29 : vector<10x128xf32>
    %cst_16 = arith.constant dense<0.000000e+00> : vector<128xf32>
    %31 = vector.multi_reduction <add>, %30, %cst_16 [0] : vector<10x128xf32> to vector<128xf32>
    %32 = vector.shape_cast %31 : vector<128xf32> to vector<1x128xf32>
    %33 = tpu.reciprocal %32 {approx = true} : vector<1x128xf32> -> vector<1x128xf32>
    %34 = arith.mulf %32, %33 : vector<1x128xf32>
    %cst_17 = arith.constant 2.000000e+00 : f32
    %35 = vector.broadcast %cst_17 : f32 to vector<1x128xf32>
    %36 = arith.subf %35, %34 : vector<1x128xf32>
    %37 = arith.mulf %33, %36 : vector<1x128xf32>
    %38 = vector.broadcast %37 : vector<1x128xf32> to vector<10x128xf32>
    %39 = arith.mulf %30, %38 : vector<10x128xf32>
    %40 = arith.addf %39, %25 : vector<10x128xf32>
    %cst_18 = arith.constant 9.99999974E-5 : f32
    %41 = vector.broadcast %cst_18 : f32 to vector<10x128xf32>
    %42 = arith.maximumf %40, %41 : vector<10x128xf32>
    %cst_19 = arith.constant dense<0.000000e+00> : vector<128xf32>
    %43 = vector.multi_reduction <add>, %42, %cst_19 [0] : vector<10x128xf32> to vector<128xf32>
    %44 = vector.shape_cast %43 : vector<128xf32> to vector<1x128xf32>
    %cst_20 = arith.constant 9.99999974E-5 : f32
    %45 = vector.broadcast %cst_20 : f32 to vector<1x128xf32>
    %46 = arith.maximumf %44, %45 : vector<1x128xf32>
    %47 = tpu.reciprocal %46 {approx = true} : vector<1x128xf32> -> vector<1x128xf32>
    %48 = arith.mulf %46, %47 : vector<1x128xf32>
    %cst_21 = arith.constant 2.000000e+00 : f32
    %49 = vector.broadcast %cst_21 : f32 to vector<1x128xf32>
    %50 = arith.subf %49, %48 : vector<1x128xf32>
    %51 = arith.mulf %47, %50 : vector<1x128xf32>
    %52 = vector.broadcast %51 : vector<1x128xf32> to vector<10x128xf32>
    %53 = arith.mulf %42, %52 : vector<10x128xf32>
    %cst_22 = arith.constant 9.99999974E-5 : f32
    %cst_23 = arith.constant 1.000000e+00 : f32
    %54 = vector.broadcast %cst_22 : f32 to vector<10x128xf32>
    %55 = arith.maximumf %54, %53 : vector<10x128xf32>
    %56 = vector.broadcast %cst_23 : f32 to vector<10x128xf32>
    %57 = arith.minimumf %56, %55 : vector<10x128xf32>
    %58 = tpu.iota {dimensions = array<i32: 0>} : vector<10x128xi32>
    %59 = vector.broadcast %27 : vector<1x128xf32> to vector<10x128xf32>
    %60 = arith.cmpf oeq, %0, %59 : vector<10x128xf32>
    %c10_i32 = arith.constant 10 : i32
    %61 = vector.broadcast %c10_i32 : i32 to vector<10x128xi32>
    %62 = arith.select %60, %58, %61 : vector<10x128xi1>, vector<10x128xi32>
    %cst_24 = arith.constant dense<2147483647> : vector<128xi32>
    %63 = vector.multi_reduction <minsi>, %62, %cst_24 [0] : vector<10x128xi32> to vector<128xi32>
    %64 = vector.shape_cast %63 : vector<128xi32> to vector<1x128xi32>
    %65 = vector.broadcast %64 : vector<1x128xi32> to vector<10x128xi32>
    %66 = arith.cmpi eq, %58, %65 : vector<10x128xi32>
    %67 = arith.extui %66 : vector<10x128xi1> to vector<10x128xi32>
    %68 = arith.sitofp %67 : vector<10x128xi32> to vector<10x128xf32>
    %69 = arith.mulf %68, %9 : vector<10x128xf32>
    %70 = arith.addf %69, %25 : vector<10x128xf32>
    %71 = arith.subf %70, %1 : vector<10x128xf32>
    %72 = arith.mulf %71, %71 : vector<10x128xf32>
    %cst_25 = arith.constant dense<0.000000e+00> : vector<128xf32>
    %73 = vector.multi_reduction <add>, %72, %cst_25 [0] : vector<10x128xf32> to vector<128xf32>
    %74 = vector.shape_cast %73 : vector<128xf32> to vector<1x128xf32>
    %c0_26 = arith.constant 0 : index
    %c0_27 = arith.constant 0 : index
    %75 = vector.load %arg8[%c0_26, %c0_27] : memref<1x128xf32, #tpu.memory_space<vmem>>, vector<1x128xf32>
    tpu.vector_store %arg8[%c0_26, %c0_27], %74 {strides = array<i32>} : memref<1x128xf32, #tpu.memory_space<vmem>>, vector<1x128xf32>,
    %76 = math.log %57 : vector<10x128xf32>
    %77 = arith.mulf %1, %76 : vector<10x128xf32>
    %cst_28 = arith.constant dense<0.000000e+00> : vector<128xf32>
    %78 = vector.multi_reduction <add>, %77, %cst_28 [0] : vector<10x128xf32> to vector<128xf32>
    %79 = vector.shape_cast %78 : vector<128xf32> to vector<1x128xf32>
    %cst_29 = arith.constant 0.000000e+00 : f32
    %80 = vector.broadcast %cst_29 : f32 to vector<1x128xf32>
    %81 = arith.subf %80, %79 : vector<1x128xf32>
    %c0_30 = arith.constant 0 : index
    %c0_31 = arith.constant 0 : index
    %82 = vector.load %arg7[%c0_30, %c0_31] : memref<1x128xf32, #tpu.memory_space<vmem>>, vector<1x128xf32>
    tpu.vector_store %arg7[%c0_30, %c0_31], %81 {strides = array<i32>} : memref<1x128xf32, #tpu.memory_space<vmem>>, vector<1x128xf32>,
    %c0_32 = arith.constant 0 : index
    %c0_33 = arith.constant 0 : index
    %83 = vector.load %arg6[%c0_32, %c0_33] : memref<10x128xf32, #tpu.memory_space<vmem>>, vector<10x128xf32>
    tpu.vector_store %arg6[%c0_32, %c0_33], %57 {strides = array<i32>} : memref<10x128xf32, #tpu.memory_space<vmem>>, vector<10x128xf32>,
    return
  }
  func.func @transform_0(%arg0: i32) -> (i32, i32) {
    %c0_i32 = arith.constant 0 : i32
    %c0_i32_0 = arith.constant 0 : i32
    return %c0_i32, %arg0 : i32, i32
  }
  func.func @transform_1(%arg0: i32) -> (i32, i32) {
    %c0_i32 = arith.constant 0 : i32
    %c0_i32_0 = arith.constant 0 : i32
    return %c0_i32, %arg0 : i32, i32
  }
  func.func @transform_2(%arg0: i32) -> (i32, i32) {
    %c0_i32 = arith.constant 0 : i32
    %c0_i32_0 = arith.constant 0 : i32
    return %c0_i32, %arg0 : i32, i32
  }
  func.func @transform_3(%arg0: i32) -> (i32, i32) {
    %c0_i32 = arith.constant 0 : i32
    %c0_i32_0 = arith.constant 0 : i32
    return %c0_i32, %arg0 : i32, i32
  }
  func.func @transform_4(%arg0: i32) -> (i32, i32) {
    %c0_i32 = arith.constant 0 : i32
    %c0_i32_0 = arith.constant 0 : i32
    return %c0_i32, %arg0 : i32, i32
  }
  func.func @transform_5(%arg0: i32) -> (i32, i32) {
    %c0_i32 = arith.constant 0 : i32
    %c0_i32_0 = arith.constant 0 : i32
    return %c0_i32, %arg0 : i32, i32
  }
  func.func @transform_6(%arg0: i32) -> (i32, i32) {
    %c0_i32 = arith.constant 0 : i32
    %c0_i32_0 = arith.constant 0 : i32
    return %c0_i32, %arg0 : i32, i32
  }
  func.func @transform_7(%arg0: i32) -> (i32, i32) {
    %c0_i32 = arith.constant 0 : i32
    %c0_i32_0 = arith.constant 0 : i32
    return %c0_i32, %arg0 : i32, i32
  }
}

</mosaic_0001>

<bundles_post_ra>
// kernel: tpu_custom_call.1
= control target key start
LH: loop header
LB: loop body
LE: loop exit
PB: predicated region body
PF: predicated region fallthrough
CT: control target
= control target key end

     0   :  { %13 = vsyncpa [#allocation3], 0  ;;  %s668_s0 = inlined_call_operand.hbm [shape: f32[10,128], index: 0, kind: input, shape index: {}]   ;;  %s669_s1 = inlined_call_operand.hbm [shape: f32[10,128], index: 1, kind: input, shape index: {}]   ;;  %s670_s2 = inlined_call_operand.vmem [shape: f32[1,128], index: 2, kind: input, shape index: {}]   ;;  %s671_s3 = inlined_call_operand.hbm [shape: f32[10,128], index: 3, kind: input, shape index: {}]   ;;  %s672_s4 = inlined_call_operand.hbm [shape: f32[10,128], index: 4, kind: input, shape index: {}]   ;;  %s673_s5 = inlined_call_operand.hbm [shape: f32[10,128], index: 5, kind: output, shape index: {0}]   ;;  %s674_s6 = inlined_call_operand.hbm [shape: f32[1,128], index: 6, kind: output, shape index: {1}]   ;;  %s675_s7 = inlined_call_operand.hbm [shape: f32[1,128], index: 7, kind: output, shape index: {2}]  }
   0x1   :  { %14 = vsyncpa [#allocation6], 0 }
   0x2   :  { %15 = vsyncpa [#allocation9], 0 }
   0x3   :  { %16 = vsyncpa [#allocation4], 0 }
   0x4   :  { %17 = vsyncpa [#allocation12], 0  ;;  %s466_s24 = smov [#allocation5]   ;;  %s467_s26 = smov [#allocation2]  }
   0x5   :  { %s35_s25 = sshll.u32 %s466_s24, 4  ;;  %s23_s27 = sshll.u32 %s467_s26, 4  ;;  %s36_s25 = int_to_ptr.vmem [resolvable:$true] %s35_s25  ;;  %s516_s27 = int_to_ptr.vmem [resolvable:$true] %s23_s27 }
   0x6   :  { %s302_s30 = scalar_lea.hbm %s669_s1, 256 }
   0x7   :  { %p303_p0 = scmp.ne.s32.totalorder %s669_s1, %s302_s30  ;;  %p306_p1 = scmp.lt.u32.totalorder %s302_s30, %s669_s1 }
   0x9   :  { %p308_p2 = pnand %p306_p1, %p303_p0 }
   0xb   :  { %311 = shalt.err (!%p308_p2)
}
   0xc   :  { %s312_s12 = scalar_lea.vmem %s36_s25, 256  ;;  %p317_p4 = scmp.lt.s32.totalorder %s36_s25, %s36_s25 }
   0xd   :  { %p313_p3 = scmp.ne.s32.totalorder %s36_s25, %s312_s12  ;;  %p318_p5 = scmp.lt.s32.totalorder %s312_s12, %s312_s12 }
   0xf   :  { %p319_p6 = por %p318_p5, %p317_p4 }
  0x11   :  { %p320_p7 = pnand %p319_p6, %p313_p3 }
  0x13   :  { %323 = shalt.err (!%p320_p7)
}
  0x14   :  { %s468_s13 = smov 128   ;;  %s469_s14 = smov 8  }
  0x15   :  { %41 = dma.hbm_to_vmem [thread:$0]  %s669_s1, 256, %s36_s25, [#allocation6], %s468_s13, %s468_s13, %s469_s14  }
  0x16   :  { %s324_s19 = scalar_lea.hbm %s668_s0, 256 }
  0x17   :  { %p325_p8 = scmp.ne.s32.totalorder %s668_s0, %s324_s19  ;;  %p328_p9 = scmp.lt.u32.totalorder %s324_s19, %s668_s0 }
  0x19   :  { %p330_p10 = pnand %p328_p9, %p325_p8 }
  0x1b   :  { %333 = shalt.err (!%p330_p10)
}
  0x1c   :  { %s334_s24 = scalar_lea.vmem %s516_s27, 256  ;;  %p339_p12 = scmp.lt.s32.totalorder %s516_s27, %s516_s27 }
  0x1d   :  { %p335_p11 = scmp.ne.s32.totalorder %s516_s27, %s334_s24  ;;  %p340_p13 = scmp.lt.s32.totalorder %s334_s24, %s334_s24 }
  0x1f   :  { %p341_p0 = por %p340_p13, %p339_p12 }
  0x21   :  { %p342_p1 = pnand %p341_p0, %p335_p11 }
  0x23   :  { %345 = shalt.err (!%p342_p1)
}
  0x24   :  { %29 = dma.hbm_to_vmem [thread:$0]  %s668_s0, 256, %s516_s27, [#allocation3], %s468_s13, %s468_s13, %s469_s14  }
  0x25   :  { %s470_s26 = smov [#allocation7]   ;;  %s471_s29 = smov [#allocation8]  }
  0x26   :  { %s49_s28 = sshll.u32 %s470_s26, 4  ;;  %s61_s30 = sshll.u32 %s471_s29, 4  ;;  %s50_s28 = int_to_ptr.vmem [resolvable:$true] %s49_s28  ;;  %s553_s30 = int_to_ptr.vmem [resolvable:$true] %s61_s30 }
  0x27   :  { %s346_s10 = scalar_lea.hbm %s671_s3, 256 }
  0x28   :  { %p347_p2 = scmp.ne.s32.totalorder %s671_s3, %s346_s10  ;;  %p350_p3 = scmp.lt.u32.totalorder %s346_s10, %s671_s3 }
  0x2a   :  { %p352_p4 = pnand %p350_p3, %p347_p2 }
  0x2c   :  { %355 = shalt.err (!%p352_p4)
}
  0x2d   :  { %s356_s0 = scalar_lea.vmem %s50_s28, 256  ;;  %p361_p6 = scmp.lt.s32.totalorder %s50_s28, %s50_s28 }
  0x2e   :  { %p357_p5 = scmp.ne.s32.totalorder %s50_s28, %s356_s0  ;;  %p362_p7 = scmp.lt.s32.totalorder %s356_s0, %s356_s0 }
  0x30   :  { %p363_p8 = por %p362_p7, %p361_p6 }
  0x32   :  { %p364_p9 = pnand %p363_p8, %p357_p5 }
  0x34   :  { %367 = shalt.err (!%p364_p9)
}
  0x35   :  { %55 = dma.hbm_to_vmem [thread:$0]  %s671_s3, 256, %s50_s28, [#allocation6], %s468_s13, %s468_s13, %s469_s14  }
  0x36   :  { %s368_s20 = scalar_lea.hbm %s672_s4, 256 }
  0x37   :  { %p369_p10 = scmp.ne.s32.totalorder %s672_s4, %s368_s20  ;;  %p372_p11 = scmp.lt.u32.totalorder %s368_s20, %s672_s4 }
  0x39   :  { %p374_p12 = pnand %p372_p11, %p369_p10 }
  0x3b   :  { %377 = shalt.err (!%p374_p12)
}
  0x3c   :  { %s378_s1 = scalar_lea.vmem %s553_s30, 256  ;;  %p383_p0 = scmp.lt.s32.totalorder %s553_s30, %s553_s30 }
  0x3d   :  { %p379_p13 = scmp.ne.s32.totalorder %s553_s30, %s378_s1  ;;  %p384_p1 = scmp.lt.s32.totalorder %s378_s1, %s378_s1 }
  0x3f   :  { %p385_p2 = por %p384_p1, %p383_p0 }
  0x41   :  { %p386_p3 = pnand %p385_p2, %p379_p13 }
  0x43   :  { %389 = shalt.err (!%p386_p3)
}
  0x44   :  { %67 = dma.hbm_to_vmem [thread:$0]  %s672_s4, 256, %s553_s30, [#allocation9], %s468_s13, %s468_s13, %s469_s14  }
  0x45   :  { %456 = dma.done.wait [#allocation3], 256  }
  0x46   :  { %457 = vsyncadd [#allocation3], 4294967040 }
  0x47   :  { %458 = dma.done.wait [#allocation6], 512  }
  0x48   :  { %459 = vsyncadd [#allocation6], 4294966784 }
  0x49   :  { %460 = dma.done.wait [#allocation9], 256  }
  0x4a   :  { %461 = vsyncadd [#allocation9], 4294967040  ;;  %vm120_vm0 = vcmask 1041408   ;;  %v80_v0 = vld [vmem:[#allocation2] sm:$0xff]  ;;  %v81_v1 = vld [vmem:[#allocation2 + $0x8] sm:$0x3]  ;;  %v97_v5 = vlaneseq }
  0x4b   :  { %v121_v2 = vsel %vm120_vm0, %v81_v1, -inf  ;;  %v84_v10 = vld [vmem:[%s670_s2] sm:$0x1]  ;;  %v599_v13 = vld [vmem:[#allocation5] sm:$0xff]  ;;  %v602_v18 = vld [vmem:[#allocation5 + $0x8] sm:$0x3] }
  0x4c   :  { %v122_v3 = vmax.f32 %v80_v0, %v121_v2  ;;  %v591_v8 = vshrl.u32 %v97_v5, 7  ;;  %v85_v14 = vld [vmem:[#allocation7] sm:$0xff]  ;;  %v95_v15 = vmul.f32 %v84_v10, %v84_v10  ;;  %v86_v19 = vld [vmem:[#allocation7 + $0x8] sm:$0x3]  ;;  %v110_v23 = vsub.f32 1.0, %v599_v13  ;;  %v87_v32 = vld [vmem:[#allocation8] sm:$0xff] }
  0x4d   :  { %v108_v22 = vmul.f32 %v85_v14, %v85_v14  ;;  %v109_v30 = vmul.f32 %v86_v19, %v86_v19  ;;  %v111_v31 = vsub.f32 1.0, %v602_v18  ;;  %v88_v33 = vld [vmem:[#allocation8 + $0x8] sm:$0x3]  ;;  %v89_v38 = vmul.f32 %v87_v32, %v87_v32  ;;  %s473_s2 = smov [#allocation10]  }
  0x4e   :  { %v123_v4 = vrot.slane %v122_v3, 4  ;;  %v597_v12 = vadd.s32 8, %v591_v8  ;;  %v99_v16 = vsub.s32 0, %v591_v8  ;;  %v90_v41 = vmul.f32 %v88_v33, %v88_v33  ;;  %s237_s28 = sshll.u32 %s473_s2, 4  ;;  %s238_s28 = int_to_ptr.vmem [resolvable:$true] %s237_s28 }
  0x4f   :  { %v112_v37 = vmul.f32 %v110_v23, %v108_v22  ;;  %v113_v40 = vmul.f32 %v111_v31, %v109_v30  ;;  %v91_v46 = vmax.f32 %v89_v38, 0.0  ;;  %s390_s29 = scalar_lea.vmem %s238_s28, 256  ;;  %p395_p5 = scmp.lt.s32.totalorder %s238_s28, %s238_s28 }
  0x50   :  { %v124_v6 = vmax.f32 %v122_v3, %v123_v4  ;;  %v100_v26 = vrot.slane %v95_v15, %v99_v16  ;;  %v92_v49 = vmax.f32 %v90_v41, 0.0  ;;  %p391_p4 = scmp.ne.s32.totalorder %s238_s28, %s390_s29  ;;  %p396_p6 = scmp.lt.s32.totalorder %s390_s29, %s390_s29 }
  0x51   :  { %v114_v45 = vmax.f32 %v112_v37, 0.0  ;;  %v115_v48 = vmax.f32 %v113_v40, 0.0  ;;  %v93_v55 = vmin.f32 %v91_v46, 1.0 }
  0x52   :  { %v125_v7 = vrot.slane %v124_v6, 2  ;;  %v102_v36 = vmul.f32 %v100_v26, %v599_v13  ;;  %v103_v39 = vmul.f32 %v100_v26, %v602_v18  ;;  %v94_v59 = vmin.f32 %v92_v49, 1.0  ;;  %p397_p7 = por %p396_p6, %p395_p5 }
  0x53   :  { %v116_v54 = vmin.f32 %v114_v45, 1.0  ;;  %v117_v58 = vmin.f32 %v115_v48, 1.0 }
  0x54   :  { %v126_v9 = vmax.f32 %v124_v6, %v125_v7  ;;  %v104_v44 = vmax.f32 %v102_v36, 0.0  ;;  %v105_v47 = vmax.f32 %v103_v39, 0.0  ;;  %p398_p8 = pnand %p397_p7, %p391_p4 }
  0x56   :  { %v127_v11 = vrot.slane %v126_v9, 1  ;;  %v106_v53 = vmin.f32 %v104_v44, 1.0  ;;  %v107_v57 = vmin.f32 %v105_v47, 1.0 }
  0x58   :  { %v128_v17 = vmax.f32 %v126_v9, %v127_v11  ;;  %v118_v63 = vsub.f32 %v106_v53, %v116_v54  ;;  %v119_v3 = vsub.f32 %v107_v57, %v117_v58 }
  0x5a   :  { %v129_v20 = vsub.f32 %v80_v0, %v128_v17  ;;  %v130_v21 = vsub.f32 %v81_v1, %v128_v17  ;;  %vm175_vm1 = vcmp.eq.f32.partialorder %v80_v0, %v128_v17  ;;  %vm176_vm2 = vcmp.eq.f32.partialorder %v81_v1, %v128_v17 }
  0x5b   :  { %v177_v24 = vsel %vm175_vm1, %v591_v8, 10  ;;  %v178_v25 = vsel %vm176_vm2, %v597_v12, 10  ;;  %v472_v0 = vmov 0.0  }
  0x5c   :  { %v131_v27 = vmul.f32 1.442695, %v129_v20  ;;  %v133_v28 = vmul.f32 1.442695, %v130_v21  ;;  %v179_v29 = vsel %vm120_vm0, %v178_v25, 2147483647 }
  0x5d   :  { %vm180_vm3 = vcmp.lt.s32.totalorder %v177_v24, %v179_v29 }
  0x5e   :  { %290 = vpow2.f32 %v131_v27  ;;  %v181_v34 = vsel %vm180_vm3, %v177_v24, %v179_v29 }
  0x5f   :  { %292 = vpow2.f32 %v133_v28  ;;  %v182_v35 = vrot.slane %v181_v34, 4 }
  0x61   :  { %vm183_vm4 = vcmp.lt.s32.totalorder %v181_v34, %v182_v35 }
  0x62   :  { %v184_v42 = vsel %vm183_vm4, %v181_v34, %v182_v35 }
  0x63   :  { %v185_v43 = vrot.slane %v184_v42, 2 }
  0x65   :  { %vm186_vm5 = vcmp.lt.s32.totalorder %v184_v42, %v185_v43 }
  0x66   :  { %v187_v50 = vsel %vm186_vm5, %v184_v42, %v185_v43 }
  0x67   :  { %v188_v51 = vrot.slane %v187_v50, 1 }
  0x68   :  { %v291_v52 = vpop.eup %290 }
  0x69   :  { %v293_v56 = vpop.eup %292  ;;  %vm189_vm6 = vcmp.lt.s32.totalorder %v187_v50, %v188_v51 }
  0x6a   :  { %v135_v60 = vsel %vm120_vm0, %v293_v56, 0.0  ;;  %v190_v61 = vsel %vm189_vm6, %v187_v50, %v188_v51 }
  0x6b   :  { %v136_v62 = vadd.f32 %v291_v52, %v135_v60  ;;  %vm191_vm7 = vcmp.eq.s32.totalorder %v591_v8, %v190_v61  ;;  %vm192_vm8 = vcmp.eq.s32.totalorder %v597_v12, %v190_v61 }
  0x6c   :  { %v278_v1 = vsel %vm191_vm7, 1.0, %v472_v0  ;;  %v279_v2 = vsel %vm192_vm8, 1.0, %v472_v0 }
  0x6d   :  { %v137_v4 = vrot.slane %v136_v62, 4  ;;  %v197_v5 = vmul.f32 %v278_v1, %v93_v55  ;;  %v198_v6 = vmul.f32 %v279_v2, %v94_v59 }
  0x6f   :  { %v138_v7 = vadd.f32 %v137_v4, %v136_v62  ;;  %v199_v9 = vadd.f32 %v197_v5, %v118_v63  ;;  %v200_v10 = vadd.f32 %v198_v6, %v119_v3 }
  0x71   :  { %v139_v11 = vrot.slane %v138_v7, 2  ;;  %v201_v14 = vsub.f32 %v199_v9, %v599_v13  ;;  %v202_v15 = vsub.f32 %v200_v10, %v602_v18 }
  0x73   :  { %v140_v16 = vadd.f32 %v139_v11, %v138_v7  ;;  %v203_v8 = vmul.f32 %v201_v14, %v201_v14  ;;  %v204_v17 = vmul.f32 %v202_v15, %v202_v15 }
  0x75   :  { %v141_v12 = vrot.slane %v140_v16, 1  ;;  %v205_v19 = vsel %vm120_vm0, %v204_v17, 0.0 }
  0x76   :  { %v206_v20 = vadd.f32 %v205_v19, %v203_v8 }
  0x77   :  { %v142_v21 = vadd.f32 %v141_v12, %v140_v16 }
  0x78   :  { %v207_v22 = vrot.slane %v206_v20, 4 }
  0x79   :  { %294 = vrcp.f32 %v142_v21 }
  0x7a   :  { %v208_v23 = vadd.f32 %v207_v22, %v206_v20 }
  0x7c   :  { %v209_v24 = vrot.slane %v208_v23, 2 }
  0x7e   :  { %v210_v25 = vadd.f32 %v209_v24, %v208_v23 }
  0x80   :  { %v211_v26 = vrot.slane %v210_v25, 1 }
  0x82   :  { %v212_v27 = vadd.f32 %v211_v26, %v210_v25 }
  0x83   :  { %v295_v28 = vpop.eup %294 }
  0x84   :  { %v144_v29 = vmul.f32 %v295_v28, %v142_v21  ;;  %213 = vst [vmem:[#allocation13] sm:$0x1] %v212_v27 }
  0x86   :  { %v145_v30 = vsub.f32 2.0, %v144_v29 }
  0x88   :  { %v146_v31 = vmul.f32 %v295_v28, %v145_v30 }
  0x8a   :  { %v147_v32 = vmul.f32 %v291_v52, %v146_v31  ;;  %v148_v33 = vmul.f32 %v293_v56, %v146_v31 }
  0x8c   :  { %v149_v34 = vadd.f32 %v147_v32, %v118_v63  ;;  %v150_v35 = vadd.f32 %v148_v33, %v119_v3 }
  0x8e   :  { %v151_v36 = vmax.f32 %v149_v34, 0.0001  ;;  %v152_v37 = vmax.f32 %v150_v35, 0.0001 }
  0x90   :  { %v153_v38 = vsel %vm120_vm0, %v152_v37, 0.0 }
  0x91   :  { %v154_v39 = vadd.f32 %v153_v38, %v151_v36 }
  0x93   :  { %v155_v40 = vrot.slane %v154_v39, 4 }
  0x95   :  { %v156_v41 = vadd.f32 %v155_v40, %v154_v39 }
  0x97   :  { %v157_v42 = vrot.slane %v156_v41, 2 }
  0x99   :  { %v158_v43 = vadd.f32 %v157_v42, %v156_v41 }
  0x9b   :  { %v159_v44 = vrot.slane %v158_v43, 1 }
  0x9d   :  { %v160_v45 = vadd.f32 %v159_v44, %v158_v43 }
  0x9f   :  { %v161_v46 = vmax.f32 %v160_v45, 0.0001 }
  0xa1   :  { %296 = vrcp.f32 %v161_v46 }
  0xab   :  { %v297_v47 = vpop.eup %296 }
  0xac   :  { %v163_v48 = vmul.f32 %v297_v47, %v161_v46 }
  0xae   :  { %v164_v49 = vsub.f32 2.0, %v163_v48 }
  0xb0   :  { %v165_v50 = vmul.f32 %v297_v47, %v164_v49 }
  0xb2   :  { %v166_v51 = vmul.f32 %v165_v50, %v151_v36  ;;  %v167_v52 = vmul.f32 %v165_v50, %v152_v37 }
  0xb4   :  { %v168_v53 = vmax.f32 %v166_v51, 0.0001  ;;  %v169_v54 = vmax.f32 %v167_v52, 0.0001 }
  0xb6   :  { %v170_v55 = vmin.f32 %v168_v53, 1.0  ;;  %v171_v56 = vmin.f32 %v169_v54, 1.0 }
  0xb8   :  { %298 = vlog2.f32 %v170_v55  ;;  %230 = vst [vmem:[#allocation10] sm:$0xff] %v170_v55  ;;  %231 = vst [vmem:[#allocation10 + $0x8] sm:$0x3] %v171_v56 }
  0xb9   :  { %300 = vlog2.f32 %v171_v56 }
  0xba   :  { %401 = shalt.err (!%p398_p8)
}
  0xbb   :  { %s402_s9 = scalar_lea.hbm %s673_s5, 256 }
  0xbc   :  { %p403_p9 = scmp.ne.s32.totalorder %s673_s5, %s402_s9  ;;  %p406_p10 = scmp.lt.u32.totalorder %s402_s9, %s673_s5 }
  0xbe   :  { %p408_p11 = pnand %p406_p10, %p403_p9 }
  0xc0   :  { %411 = shalt.err (!%p408_p11)
}
  0xc1   :  { %243 = dma.vmem_to_hbm [thread:$0]  %s238_s28, 256, %s673_s5, [#allocation4], %s468_s13, %s468_s13, %s469_s14  }
  0xc2   :  { %v299_v57 = vpop.eup %298  ;;  %s474_s27 = smov [#allocation11]   ;;  %s475_s5 = smov [#allocation13]  }
  0xc3   :  { %v301_v58 = vpop.eup %300  ;;  %v215_v59 = vmul.f32 0.6931472, %v299_v57  ;;  %s250_s17 = sshll.u32 %s474_s27, 4  ;;  %s260_s13 = sshll.u32 %s475_s5, 4  ;;  %s251_s17 = int_to_ptr.vmem [resolvable:$true] %s250_s17  ;;  %s636_s13 = int_to_ptr.vmem [resolvable:$true] %s260_s13 }
  0xc4   :  { %v217_v60 = vmul.f32 0.6931472, %v301_v58  ;;  %s412_s14 = scalar_lea.vmem %s251_s17, 16  ;;  %s416_s18 = scalar_lea.vmem %s251_s17, 32 }
  0xc5   :  { %v218_v61 = vmul.f32 %v215_v59, %v599_v13  ;;  %p413_p12 = scmp.ne.s32.totalorder %s251_s17, %s412_s14  ;;  %p417_p13 = scmp.lt.s32.totalorder %s251_s17, %s251_s17 }
  0xc6   :  { %v219_v62 = vmul.f32 %v217_v60, %v602_v18  ;;  %p418_p0 = scmp.lt.s32.totalorder %s416_s18, %s412_s14 }
  0xc8   :  { %v220_v63 = vsel %vm120_vm0, %v219_v62, 0.0  ;;  %p419_p1 = por %p418_p0, %p417_p13 }
  0xc9   :  { %v221_v0 = vadd.f32 %v220_v63, %v218_v61 }
  0xca   :  { %p420_p2 = pnand %p419_p1, %p413_p12 }
  0xcb   :  { %v222_v1 = vrot.slane %v221_v0, 4 }
  0xcd   :  { %v223_v2 = vadd.f32 %v222_v1, %v221_v0 }
  0xcf   :  { %v224_v3 = vrot.slane %v223_v2, 2 }
  0xd1   :  { %v225_v4 = vadd.f32 %v224_v3, %v223_v2 }
  0xd3   :  { %v226_v5 = vrot.slane %v225_v4, 1 }
  0xd5   :  { %v227_v6 = vadd.f32 %v226_v5, %v225_v4 }
  0xd7   :  { %v228_v7 = vsub.f32 0.0, %v227_v6 }
  0xd9   :  { %229 = vst [vmem:[#allocation11] sm:$0x1] %v228_v7 }
  0xda   :  { %423 = shalt.err (!%p420_p2)
}
  0xdb   :  { %s424_s21 = scalar_lea.hbm %s674_s6, 16 }
  0xdc   :  { %p425_p3 = scmp.ne.s32.totalorder %s674_s6, %s424_s21  ;;  %p428_p4 = scmp.lt.u32.totalorder %s424_s21, %s674_s6 }
  0xde   :  { %p430_p5 = pnand %p428_p4, %p425_p3 }
  0xe0   :  { %433 = shalt.err (!%p430_p5)
}
  0xe1   :  { %253 = dma.vmem_to_hbm [thread:$0]  %s251_s17, 16, %s674_s6, [#allocation12]  }
  0xe2   :  { %s434_s4 = scalar_lea.vmem %s636_s13, 16  ;;  %s438_s26 = scalar_lea.vmem %s636_s13, 32 }
  0xe3   :  { %p435_p6 = scmp.ne.s32.totalorder %s636_s13, %s434_s4  ;;  %p439_p7 = scmp.lt.s32.totalorder %s636_s13, %s636_s13 }
  0xe4   :  { %p440_p8 = scmp.lt.s32.totalorder %s438_s26, %s434_s4 }
  0xe6   :  { %p441_p9 = por %p440_p8, %p439_p7 }
  0xe8   :  { %p442_p10 = pnand %p441_p9, %p435_p6 }
  0xea   :  { %445 = shalt.err (!%p442_p10)
}
  0xeb   :  { %s446_s29 = scalar_lea.hbm %s675_s7, 16 }
  0xec   :  { %p447_p11 = scmp.ne.s32.totalorder %s675_s7, %s446_s29  ;;  %p450_p12 = scmp.lt.u32.totalorder %s446_s29, %s675_s7 }
  0xee   :  { %p452_p13 = pnand %p450_p12, %p447_p11 }
  0xf0   :  { %455 = shalt.err (!%p452_p13)
}
  0xf1   :  { %263 = dma.vmem_to_hbm [thread:$0]  %s636_s13, 16, %s675_s7, [#allocation12]  }
  0xf2   :  { %462 = dma.done.wait [#allocation4], 256  }
  0xf3   :  { %463 = vsyncadd [#allocation4], 4294967040 }
  0xf4   :  { %464 = dma.done.wait [#allocation12], 32  }
  0xf5   :  { %465 = vsyncadd [#allocation12], 4294967264 }
  0xf6   :  { %273 = vsyncpa [#allocation3], 1 }
  0xf7   :  { %274 = vsyncpa [#allocation6], 1 }
  0xf8   :  { %275 = vsyncpa [#allocation9], 1 }
  0xf9   :  { %276 = vsyncpa [#allocation4], 1 }
  0xfa   :  { %277 = vsyncpa [#allocation12], 1 }

</bundles_post_ra>
